<compile_context>
chip_gen: v5e
topology: v5e:2x2
jax: 0.10.0
libtpu: 0.0.40
codegen_flags: <defaults>
</compile_context>

<pallas_src>
import functools

import jax
import jax.numpy as jnp
from jax import lax
from jax.experimental import pallas as pl
from jax.experimental.pallas import tpu as pltpu

LANE = 128
TARGET_BLOCK_BYTES = 3 * 1024 * LANE * 4   # ~1.5 MiB per operand block


def _ccm_kernel(ccm_ref, x_ref, o_ref, *, chunk):
    """ccm_ref: (9,) f32 SMEM (scalar prefetch).  x_ref / o_ref: (3, TR, C) f32 VMEM."""
    # 3x3 coefficients as SMEM scalars (row-major), read once.
    c = [ccm_ref[i] for i in range(9)]

    def mix(off, rows):
        # One chunk: 3 input-channel tiles + 1 output tile live at a time.
        x0 = x_ref[0, pl.ds(off, rows), :]
        x1 = x_ref[1, pl.ds(off, rows), :]
        x2 = x_ref[2, pl.ds(off, rows), :]
        o_ref[0, pl.ds(off, rows), :] = jnp.clip(c[0] * x0 + c[1] * x1 + c[2] * x2, 0.0, 1.0)
        o_ref[1, pl.ds(off, rows), :] = jnp.clip(c[3] * x0 + c[4] * x1 + c[5] * x2, 0.0, 1.0)
        o_ref[2, pl.ds(off, rows), :] = jnp.clip(c[6] * x0 + c[7] * x1 + c[8] * x2, 0.0, 1.0)

    tr = x_ref.shape[1]
    n_full = tr // chunk
    if n_full > 0:
        def body(i, carry):
            mix(pl.multiple_of(i * chunk, chunk), chunk)
            return carry
        lax.fori_loop(0, n_full, body, 0)
    rem = tr - n_full * chunk            # static Python int
    if rem:
        mix(n_full * chunk, rem)         # static offset, masked sub-8 rows OK


def _row_block(num_rows, num_cols, num_batch):
    """Pick (row_block, chunk_rows) for an (N, 3, R, C) view."""
    lane_tiles = -(-num_cols // LANE)
    # Keep ~<=32 f32 vregs live per chunk: (3 inputs + 1 output) * rows/8 * lane_tiles.
    chunk = max(8, ((64 // lane_tiles) // 8) * 8)
    rows = TARGET_BLOCK_BYTES // (3 * num_cols * 4)
    rows = max(chunk, (rows // chunk) * chunk)     # multiple of chunk (and of 8)
    if rows >= num_rows:
        rows = num_rows                            # full-extent block dim: always legal
    # v7x megacore: ensure >= 2 parallel grid cells whenever the image allows it.
    if num_batch * (-(-num_rows // rows)) < 2 and num_rows >= 16:
        rows = max(8, ((num_rows // 2) // 8) * 8)
    return rows, chunk


@jax.jit
def ccm_forward(x, ccm):
    """x: (N, 3, H, W) float32, ccm: (3, 3) float32 -> clamp(ccm @ x, 0, 1)."""
    n, ch, h, w = x.shape
    assert ch == 3, "CCM expects 3 input channels"
    # Keep the kernel purely bandwidth-bound: no hidden astype pass on x.
    # TODO(synk): accept bf16/uint8 inputs and widen to f32 in-kernel if upstream
    # ever produces them (halves/quarters HBM read traffic).
    assert x.dtype == jnp.float32, "CCM kernel expects float32 input"

    p = h * w
    if p % LANE == 0:
        # Dense flat view: per-channel (R,128) slabs; the reshape is copy-free.
        rows_total, cols = p // LANE, LANE
        x_view = x.reshape(n, 3, rows_total, cols)
    else:
        # Native view: rows of H, full W on the lane dim; no pad / slice copies.
        rows_total, cols = h, w
        x_view = x

    tr, chunk = _row_block(rows_total, cols, n)
    grid = (n, pl.cdiv(rows_total, tr))            # trailing partial row-block is masked
    blk = (None, 3, tr, cols)                      # batch dim squeezed in-kernel
    idx = lambda b, i, ccm_smem: (b, 0, i, 0)      # ccm_smem = scalar-prefetch ref (unused)

    kernel = functools.partial(_ccm_kernel, chunk=chunk)

    y_view = pl.pallas_call(
        kernel,
        out_shape=jax.ShapeDtypeStruct((n, 3, rows_total, cols), jnp.float32),
        grid_spec=pltpu.PrefetchScalarGridSpec(
            num_scalar_prefetch=1,                 # ccm (9,) -> SMEM scalars
            grid=grid,
            in_specs=[pl.BlockSpec(blk, idx)],
            out_specs=pl.BlockSpec(blk, idx),
        ),
        compiler_params=pltpu.CompilerParams(
            dimension_semantics=("parallel", "parallel")),
        cost_estimate=pl.CostEstimate(
            flops=17 * n * p, transcendentals=0,
            bytes_accessed=2 * n * 3 * p * 4),
    )(ccm.astype(jnp.float32).reshape(9), x_view)

    return y_view.reshape(n, 3, h, w)


def _reference(x, ccm):
    # Same math as the PyTorch forward (permute -> mm -> clamp -> reshape back).
    n, _, h, w = x.shape
    x_flat = jnp.transpose(x, (1, 0, 2, 3)).reshape(3, -1)
    y = jnp.clip(jnp.matmul(ccm, x_flat, precision=jax.lax.Precision.HIGHEST),
                 0.0, 1.0)
    return jnp.transpose(y.reshape(3, n, h, w), (1, 0, 2, 3))


if __name__ == "__main__":
    key = jax.random.PRNGKey(0)
    k_ccm, k_x1, k_x2 = jax.random.split(key, 3)

    # Deterministic synthetic init matching torch: eye(3) + noise * (rand - 0.5).
    ccm = jnp.eye(3, dtype=jnp.float32) + 0.1 * (
        jax.random.uniform(k_ccm, (3, 3), dtype=jnp.float32) - 0.5)

    # Aligned path (H*W % 128 == 0): dense flat layout.
    x1 = jax.random.uniform(k_x1, (2, 3, 16, 16), dtype=jnp.float32)
    y1 = jax.block_until_ready(ccm_forward(x1, ccm))
    assert y1.shape == x1.shape
    assert jnp.allclose(y1, _reference(x1, ccm), atol=1e-5, rtol=1e-5)

    # Misaligned path (H*W % 128 != 0): native-view blocking, no pad/slice.
    x2 = jax.random.uniform(k_x2, (1, 3, 20, 20), dtype=jnp.float32)
    y2 = jax.block_until_ready(ccm_forward(x2, ccm))
    assert y2.shape == x2.shape
    assert jnp.allclose(y2, _reference(x2, ccm), atol=1e-5, rtol=1e-5)

    # TODO(synk): CCM.clamp() (in-place parameter clamp to [-5, 5]) is a training
    # utility, not part of the forward pass; not implemented as a kernel.
    print("KERNEL_OK")
</pallas_src>

<mosaic_0001>
module attributes {stable_mosaic.version = 11 : i64} {
  func.func @_ccm_kernel(%arg0: i32, %arg1: i32, %arg2: memref<9xf32, #tpu.memory_space<smem>>, %arg3: memref<1x3x2x128xf32, #tpu.memory_space<vmem>>, %arg4: memref<1x3x2x128xf32, #tpu.memory_space<vmem>>) attributes {dimension_semantics = [#tpu.dimension_semantics<parallel>, #tpu.dimension_semantics<parallel>], iteration_bounds = array<i64: 2, 1>, scalar_prefetch = 1 : i64, scratch_operands = 0 : i64, tpu.core_type = #tpu.core_type<tc>, window_params = [{transform_indices = @transform_0, window_bounds = array<i64: 1, 3, 2, 128>}, {transform_indices = @transform_1, window_bounds = array<i64: 1, 3, 2, 128>}]} {
    %c0 = arith.constant 0 : index
    %0 = memref.load %arg2[%c0] : memref<9xf32, #tpu.memory_space<smem>>
    %c1 = arith.constant 1 : index
    %1 = memref.load %arg2[%c1] : memref<9xf32, #tpu.memory_space<smem>>
    %c2 = arith.constant 2 : index
    %2 = memref.load %arg2[%c2] : memref<9xf32, #tpu.memory_space<smem>>
    %c3 = arith.constant 3 : index
    %3 = memref.load %arg2[%c3] : memref<9xf32, #tpu.memory_space<smem>>
    %c4 = arith.constant 4 : index
    %4 = memref.load %arg2[%c4] : memref<9xf32, #tpu.memory_space<smem>>
    %c5 = arith.constant 5 : index
    %5 = memref.load %arg2[%c5] : memref<9xf32, #tpu.memory_space<smem>>
    %c6 = arith.constant 6 : index
    %6 = memref.load %arg2[%c6] : memref<9xf32, #tpu.memory_space<smem>>
    %c7 = arith.constant 7 : index
    %7 = memref.load %arg2[%c7] : memref<9xf32, #tpu.memory_space<smem>>
    %c8 = arith.constant 8 : index
    %8 = memref.load %arg2[%c8] : memref<9xf32, #tpu.memory_space<smem>>
    %c0_0 = arith.constant 0 : index
    %c0_1 = arith.constant 0 : index
    %c0_2 = arith.constant 0 : index
    %c0_3 = arith.constant 0 : index
    %9 = vector.load %arg3[%c0_0, %c0_1, %c0_2, %c0_3] : memref<1x3x2x128xf32, #tpu.memory_space<vmem>>, vector<1x1x2x128xf32>
    %10 = vector.shape_cast %9 : vector<1x1x2x128xf32> to vector<2x128xf32>
    %c0_4 = arith.constant 0 : index
    %c1_5 = arith.constant 1 : index
    %c0_6 = arith.constant 0 : index
    %c0_7 = arith.constant 0 : index
    %11 = vector.load %arg3[%c0_4, %c1_5, %c0_6, %c0_7] : memref<1x3x2x128xf32, #tpu.memory_space<vmem>>, vector<1x1x2x128xf32>
    %12 = vector.shape_cast %11 : vector<1x1x2x128xf32> to vector<2x128xf32>
    %c0_8 = arith.constant 0 : index
    %c2_9 = arith.constant 2 : index
    %c0_10 = arith.constant 0 : index
    %c0_11 = arith.constant 0 : index
    %13 = vector.load %arg3[%c0_8, %c2_9, %c0_10, %c0_11] : memref<1x3x2x128xf32, #tpu.memory_space<vmem>>, vector<1x1x2x128xf32>
    %14 = vector.shape_cast %13 : vector<1x1x2x128xf32> to vector<2x128xf32>
    %15 = vector.broadcast %0 : f32 to vector<2x128xf32>
    %16 = arith.mulf %15, %10 : vector<2x128xf32>
    %17 = vector.broadcast %1 : f32 to vector<2x128xf32>
    %18 = arith.mulf %17, %12 : vector<2x128xf32>
    %19 = arith.addf %16, %18 : vector<2x128xf32>
    %20 = vector.broadcast %2 : f32 to vector<2x128xf32>
    %21 = arith.mulf %20, %14 : vector<2x128xf32>
    %22 = arith.addf %19, %21 : vector<2x128xf32>
    %cst = arith.constant 0.000000e+00 : f32
    %cst_12 = arith.constant 1.000000e+00 : f32
    %23 = vector.broadcast %cst : f32 to vector<2x128xf32>
    %24 = arith.maximumf %23, %22 : vector<2x128xf32>
    %25 = vector.broadcast %cst_12 : f32 to vector<2x128xf32>
    %26 = arith.minimumf %25, %24 : vector<2x128xf32>
    %c0_13 = arith.constant 0 : index
    %c0_14 = arith.constant 0 : index
    %c0_15 = arith.constant 0 : index
    %c0_16 = arith.constant 0 : index
    %27 = vector.load %arg4[%c0_13, %c0_14, %c0_15, %c0_16] : memref<1x3x2x128xf32, #tpu.memory_space<vmem>>, vector<1x1x2x128xf32>
    %28 = vector.shape_cast %27 : vector<1x1x2x128xf32> to vector<2x128xf32>
    %29 = vector.shape_cast %26 : vector<2x128xf32> to vector<1x1x2x128xf32>
    tpu.vector_store %arg4[%c0_13, %c0_14, %c0_15, %c0_16], %29 {strides = array<i32>} : memref<1x3x2x128xf32, #tpu.memory_space<vmem>>, vector<1x1x2x128xf32>,
    %30 = vector.broadcast %3 : f32 to vector<2x128xf32>
    %31 = arith.mulf %30, %10 : vector<2x128xf32>
    %32 = vector.broadcast %4 : f32 to vector<2x128xf32>
    %33 = arith.mulf %32, %12 : vector<2x128xf32>
    %34 = arith.addf %31, %33 : vector<2x128xf32>
    %35 = vector.broadcast %5 : f32 to vector<2x128xf32>
    %36 = arith.mulf %35, %14 : vector<2x128xf32>
    %37 = arith.addf %34, %36 : vector<2x128xf32>
    %cst_17 = arith.constant 0.000000e+00 : f32
    %cst_18 = arith.constant 1.000000e+00 : f32
    %38 = vector.broadcast %cst_17 : f32 to vector<2x128xf32>
    %39 = arith.maximumf %38, %37 : vector<2x128xf32>
    %40 = vector.broadcast %cst_18 : f32 to vector<2x128xf32>
    %41 = arith.minimumf %40, %39 : vector<2x128xf32>
    %c0_19 = arith.constant 0 : index
    %c1_20 = arith.constant 1 : index
    %c0_21 = arith.constant 0 : index
    %c0_22 = arith.constant 0 : index
    %42 = vector.load %arg4[%c0_19, %c1_20, %c0_21, %c0_22] : memref<1x3x2x128xf32, #tpu.memory_space<vmem>>, vector<1x1x2x128xf32>
    %43 = vector.shape_cast %42 : vector<1x1x2x128xf32> to vector<2x128xf32>
    %44 = vector.shape_cast %41 : vector<2x128xf32> to vector<1x1x2x128xf32>
    tpu.vector_store %arg4[%c0_19, %c1_20, %c0_21, %c0_22], %44 {strides = array<i32>} : memref<1x3x2x128xf32, #tpu.memory_space<vmem>>, vector<1x1x2x128xf32>,
    %45 = vector.broadcast %6 : f32 to vector<2x128xf32>
    %46 = arith.mulf %45, %10 : vector<2x128xf32>
    %47 = vector.broadcast %7 : f32 to vector<2x128xf32>
    %48 = arith.mulf %47, %12 : vector<2x128xf32>
    %49 = arith.addf %46, %48 : vector<2x128xf32>
    %50 = vector.broadcast %8 : f32 to vector<2x128xf32>
    %51 = arith.mulf %50, %14 : vector<2x128xf32>
    %52 = arith.addf %49, %51 : vector<2x128xf32>
    %cst_23 = arith.constant 0.000000e+00 : f32
    %cst_24 = arith.constant 1.000000e+00 : f32
    %53 = vector.broadcast %cst_23 : f32 to vector<2x128xf32>
    %54 = arith.maximumf %53, %52 : vector<2x128xf32>
    %55 = vector.broadcast %cst_24 : f32 to vector<2x128xf32>
    %56 = arith.minimumf %55, %54 : vector<2x128xf32>
    %c0_25 = arith.constant 0 : index
    %c2_26 = arith.constant 2 : index
    %c0_27 = arith.constant 0 : index
    %c0_28 = arith.constant 0 : index
    %57 = vector.load %arg4[%c0_25, %c2_26, %c0_27, %c0_28] : memref<1x3x2x128xf32, #tpu.memory_space<vmem>>, vector<1x1x2x128xf32>
    %58 = vector.shape_cast %57 : vector<1x1x2x128xf32> to vector<2x128xf32>
    %59 = vector.shape_cast %56 : vector<2x128xf32> to vector<1x1x2x128xf32>
    tpu.vector_store %arg4[%c0_25, %c2_26, %c0_27, %c0_28], %59 {strides = array<i32>} : memref<1x3x2x128xf32, #tpu.memory_space<vmem>>, vector<1x1x2x128xf32>,
    return
  }
  func.func @transform_0(%arg0: i32, %arg1: i32, %arg2: memref<9xf32, #tpu.memory_space<smem>>) -> (i32, i32, i32, i32) {
    %c0_i32 = arith.constant 0 : i32
    %c0_i32_0 = arith.constant 0 : i32
    %c0_i32_1 = arith.constant 0 : i32
    return %arg0, %c0_i32, %arg1, %c0_i32_0 : i32, i32, i32, i32
  }
  func.func @transform_1(%arg0: i32, %arg1: i32, %arg2: memref<9xf32, #tpu.memory_space<smem>>) -> (i32, i32, i32, i32) {
    %c0_i32 = arith.constant 0 : i32
    %c0_i32_0 = arith.constant 0 : i32
    %c0_i32_1 = arith.constant 0 : i32
    return %arg0, %c0_i32, %arg1, %c0_i32_0 : i32, i32, i32, i32
  }
}

</mosaic_0001>

<bundles_post_ra>
// kernel: ccm_forward.1
= control target key start
LH: loop header
LB: loop body
LE: loop exit
PB: predicated region body
PF: predicated region fallthrough
CT: control target
= control target key end

     0   :  { %s374_s12 = smov [#allocation3]   ;;  %s429_s0 = inlined_call_operand.vmem [shape: f32[9], index: 0, kind: input, shape index: {}]   ;;  %s430_s1 = inlined_call_operand.vmem [shape: f32[2,3,2,128], index: 1, kind: input, shape index: {}]   ;;  %s431_s2 = inlined_call_operand.vmem [shape: f32[2,3,2,128], index: 2, kind: output, shape index: {}]  }
   0x1   :  { %s8_s11 = sshll.u32 %s429_s0, 4  ;;  %s9_s11 = int_to_ptr.vmem [resolvable:$true] %s8_s11 }
   0x2   :  { %11 = dma.vmem_to_smem %s9_s11, 16, %s374_s12, [#allocation2] }
   0x3   :  { %360 = dma.done.wait [#allocation2], 16 }
   0x4   :  { %361 = vsyncadd [#allocation2], 4294967280 }
   0x5   :  { %14 = sfence }
   0x6   :  { %s393_s13 = smov 0   ;;  %s395_s14 = smov 0  }
   0x7   :  { %s397_s15 = smov 0  }
   0x8 LB: > { %s32_s0 = sadd.s32 1, %s368_s14  ;;  %p293_p0 = scmp.ge.s32.totalorder %s372_s15, 1  ;;  %s372_s15 = sphi %s397_s15, %s20_s15   ;;  %s368_s14 = sphi %s395_s14, %s433_s14   ;;  %s364_s13 = sphi %s393_s13, %s432_s13  }
   0x9   : > { %p34_p1 = scmp.ge.s32.totalorder %s32_s0, 2  ;;  %p115_p2 = scmp.lt.s32.totalorder %s372_s15, 3 }
   0xb   : > { %s435_s0 = smov (%p34_p1, %s32_s0), 0  ;;  %p116_p3 = pnand %p293_p0, %p115_p2 }
   0xc   : > { %p141_p4 = scmp.lt.s32.totalorder (!%p116_p3), %s364_s13, 1  ;;  %s157_s16 = sld [smem:[#allocation3]] (!%p116_p3) }
   0xd   : > { %119 = sbr.rel (%p116_p3) target bundleno = 37 (0x25), region = 24  ;;  %s296_s17 = sld [smem:[#allocation3 + $0x1]] (!%p116_p3) }
   0xe   : > { %s297_s18 = sld [smem:[#allocation3 + $0x2]] (!%p116_p3) }
   0xf   : > { %s298_s20 = sld [smem:[#allocation3 + $0x3]] (!%p116_p3) }
  0x10   : > { %s299_s21 = sld [smem:[#allocation3 + $0x4]] (!%p116_p3) }
  0x11   : > { %s300_s25 = sld [smem:[#allocation3 + $0x5]] (!%p116_p3) }
  0x12   : > { %s437_s13 = smov (!%p141_p4, %s364_s13), 1  ;;  %v171_v0 = vstv %s157_s16  ;;  %s301_s26 = sld [smem:[#allocation3 + $0x6]] }
  0x13   : > { %s310_s19 = smul.u32 6, %s437_s13  ;;  %v173_v4 = vstv %s296_s17  ;;  %s302_s27 = sld [smem:[#allocation3 + $0x7]] }
  0x14   : > { %v176_v7 = vstv %s297_s18  ;;  %s303_s28 = sld [smem:[#allocation3 + $0x8]] }
  0x15   : > { %s148_s24 = scalar_lea.vmem %s430_s1, %s310_s19  ;;  %v182_v10 = vstv %s298_s20  ;;  %s156_s3 = scalar_lea.vmem %s431_s2, %s310_s19 }
  0x16   : > { %v166_v1 = vld [vmem:[%s148_s24] sm:$0x3]  ;;  %v304_v2 = vld [vmem:[%s148_s24 + $0x2] sm:$0x3]  ;;  %v305_v3 = vld [vmem:[%s148_s24 + $0x4] sm:$0x3]  ;;  %v184_v12 = vstv %s299_s21 }
  0x17   : > { %v172_v5 = vmul.f32 %v171_v0, %v166_v1  ;;  %v174_v6 = vmul.f32 %v304_v2, %v173_v4  ;;  %v177_v9 = vmul.f32 %v305_v3, %v176_v7  ;;  %v183_v11 = vmul.f32 %v182_v10, %v166_v1 }
  0x18   : > { %v185_v14 = vmul.f32 %v304_v2, %v184_v12  ;;  %v187_v17 = vstv %s300_s25  ;;  %v194_v19 = vstv %s301_s26 }
  0x19   : > { %v175_v8 = vadd.f32 %v174_v6, %v172_v5  ;;  %v188_v18 = vmul.f32 %v305_v3, %v187_v17  ;;  %v195_v21 = vmul.f32 %v194_v19, %v166_v1  ;;  %v196_v22 = vstv %s302_s27 }
  0x1a   : > { %v186_v16 = vadd.f32 %v185_v14, %v183_v11  ;;  %v197_v24 = vmul.f32 %v304_v2, %v196_v22  ;;  %v199_v25 = vstv %s303_s28 }
  0x1b   : > { %v178_v13 = vadd.f32 %v177_v9, %v175_v8  ;;  %v200_v26 = vmul.f32 %v305_v3, %v199_v25 }
  0x1c   : > { %v189_v23 = vadd.f32 %v188_v18, %v186_v16  ;;  %v198_v28 = vadd.f32 %v197_v24, %v195_v21 }
  0x1d   : > { %v179_v15 = vmax.f32 %v178_v13, 0.0 }
  0x1e   : > { %v190_v27 = vmax.f32 %v189_v23, 0.0  ;;  %v201_v30 = vadd.f32 %v200_v26, %v198_v28 }
  0x1f   : > { %v180_v20 = vmin.f32 %v179_v15, 1.0 }
  0x20   : > { %v191_v29 = vmin.f32 %v190_v27, 1.0  ;;  %v202_v31 = vmax.f32 %v201_v30, 0.0 }
  0x21   : > { %181 = vst [vmem:[%s156_s3] sm:$0x3] %v180_v20 }
  0x22   : > { %306 = vst [vmem:[%s156_s3 + $0x2] sm:$0x3] %v191_v29  ;;  %v203_v32 = vmin.f32 %v202_v31, 1.0 }
  0x24   : > { %307 = vst [vmem:[%s156_s3 + $0x4] sm:$0x3] %v203_v32 }
  0x25 PF: > { %s20_s15 = sadd.s32 1, %s372_s15   ;;  %s432_s13 = smov %s368_s14 }
  0x26   : > { %p17_p5 = scmp.ge.s32.totalorder %s20_s15, 4   ;;  %s433_s14 = smov %s435_s0 }
  0x28   :  { %19 = sbr.rel (!%p17_p5) target bundleno = 8 (0x8), region = 58 }

</bundles_post_ra>
